<compile_context>
chip_gen: v7x
topology: tpu7x:2x2x1
jax: 0.10.0
libtpu: 0.0.40
codegen_flags: <defaults>
</compile_context>

<pallas_src>
import jax
import jax.numpy as jnp
from jax import lax
from jax.experimental import pallas as pl
from jax.experimental.pallas import tpu as pltpu

LANE = 128


def _recalibrate_kernel(x_ref, w_ref, b_ref, o_ref):
    """o = (ReLU(x) @ W_t + b)[:, :out_features].

    x_ref: (tile_m, in_f)          f32
    w_ref: (in_f, out_p)           f32, out_features zero-padded to lane multiple
    b_ref: (1, out_p)              f32
    o_ref: (tile_m, out_features)  f32  (un-padded, lane-masked store is cheap)
    """
    out_f = o_ref.shape[-1]
    x = jnp.maximum(x_ref[...], 0.0)                       # VPU
    acc = lax.dot_general(                                 # MXU, standard contraction
        x, w_ref[...],
        dimension_numbers=(((1,), (0,)), ((), ())),
        preferred_element_type=jnp.float32,
        precision=lax.Precision.HIGHEST,                   # f32 parity with torch Linear
    )
    y = acc + b_ref[...]
    o_ref[...] = y[:, :out_f].astype(o_ref.dtype)


def prepare_params(weight, bias, lane=LANE):
    """One-time parameter prep OUTSIDE the hot path.

    PyTorch layout weight (out_f, in_f) -> transposed, lane-padded (in_f, out_p);
    bias (out_f,) -> (1, out_p). Padded columns are zero and never stored.
    """
    out_f, in_f = weight.shape
    out_p = max(lane, ((out_f + lane - 1) // lane) * lane)
    w_t = jnp.zeros((in_f, out_p), weight.dtype).at[:, :out_f].set(weight.T)
    b_row = jnp.zeros((1, out_p), bias.dtype).at[0, :out_f].set(bias)
    return w_t, b_row


def _cost(B, in_f, out_p, out_f):
    return pl.CostEstimate(
        flops=2 * B * in_f * out_p + B * in_f,
        transcendentals=0,
        bytes_accessed=4 * (B * in_f + in_f * out_p + out_p + B * out_f),
    )


def _pick_tile_m(B, max_tile=1024, min_steps=8):
    """Large tiles (amortize ~0.35us/step) but keep >= min_steps grid steps so
    both v7x TensorCores get work and each core still double-buffers."""
    tile = max(8, min(max_tile, B // min_steps))
    return max(8, (tile // 8) * 8)


def cifar10_recalibrate(x, w_t, b_row, out_features, small_b_max=1024, tile_m=None):
    """x: (B, in_f) f32; w_t: (in_f, out_p) pre-transposed/lane-padded;
    b_row: (1, out_p). Returns (B, out_features) — no wrapper-side slicing."""
    B, in_f = x.shape
    out_p = w_t.shape[1]

    if B <= small_b_max:
        # Small/moderate batch: single straight-line call, whole arrays in VMEM,
        # real-width output emitted directly (no extra XLA slice op).
        return pl.pallas_call(
            _recalibrate_kernel,
            out_shape=jax.ShapeDtypeStruct((B, out_features), x.dtype),
            in_specs=[
                pl.BlockSpec(memory_space=pltpu.MemorySpace.VMEM),
                pl.BlockSpec(memory_space=pltpu.MemorySpace.VMEM),
                pl.BlockSpec(memory_space=pltpu.MemorySpace.VMEM),
            ],
            out_specs=pl.BlockSpec(memory_space=pltpu.MemorySpace.VMEM),
            cost_estimate=_cost(B, in_f, out_p, out_features),
        )(x, w_t, b_row)

    # Large batch: tile only the batch dim; weight/bias resident across the grid.
    if tile_m is None:
        tile_m = _pick_tile_m(B)
    grid_m = pl.cdiv(B, tile_m)
    b_pad = grid_m * tile_m
    x_run = x if b_pad == B else jnp.pad(x, ((0, b_pad - B), (0, 0)))

    y = pl.pallas_call(
        _recalibrate_kernel,
        out_shape=jax.ShapeDtypeStruct((b_pad, out_features), x.dtype),
        grid=(grid_m,),
        in_specs=[
            pl.BlockSpec((tile_m, in_f), lambda i: (i, 0)),
            pl.BlockSpec((in_f, out_p), lambda i: (0, 0)),
            pl.BlockSpec((1, out_p), lambda i: (0, 0)),
        ],
        out_specs=pl.BlockSpec((tile_m, out_features), lambda i: (i, 0)),
        compiler_params=pltpu.CompilerParams(dimension_semantics=("parallel",)),
        cost_estimate=_cost(b_pad, in_f, out_p, out_features),
    )(x_run, w_t, b_row)
    return y if b_pad == B else y[:B]


if __name__ == "__main__":
    key = jax.random.PRNGKey(0)
    kx, kw, kb, kx2, kx3 = jax.random.split(key, 5)

    in_features, out_features = 32, 16
    # Deterministic synthetic parameters (module copies layer.weight; bias default-init).
    weight = jax.random.normal(kw, (out_features, in_features), dtype=jnp.float32) * 0.1
    bias = jax.random.normal(kb, (out_features,), dtype=jnp.float32) * 0.1

    # One-time parameter prep (transpose + lane padding), outside the hot path.
    w_t, b_row = prepare_params(weight, bias)

    def reference(xv):
        return (jnp.dot(jnp.maximum(xv, 0.0), weight.T,
                        precision=lax.Precision.HIGHEST) + bias)

    # 1) Small-batch, no-grid path.
    x = jax.random.normal(kx, (8, in_features), dtype=jnp.float32)
    y = cifar10_recalibrate(x, w_t, b_row, out_features)
    jax.block_until_ready(y)
    assert y.shape == (8, out_features)
    assert jnp.allclose(y, reference(x), atol=1e-5, rtol=1e-5), "small-batch mismatch"

    # 2) Large aligned batch: batch-tiled (parallel grid, big tiles).
    x_big = jax.random.normal(kx2, (2048, in_features), dtype=jnp.float32)
    y_big = cifar10_recalibrate(x_big, w_t, b_row, out_features)
    jax.block_until_ready(y_big)
    assert y_big.shape == (2048, out_features)
    assert jnp.allclose(y_big, reference(x_big), atol=1e-5, rtol=1e-5), "tiled mismatch"

    # 3) Large ragged batch: cdiv grid + one-time batch pad (no whole-array fallback).
    x_rag = jax.random.normal(kx3, (1300, in_features), dtype=jnp.float32)
    y_rag = cifar10_recalibrate(x_rag, w_t, b_row, out_features)
    jax.block_until_ready(y_rag)
    assert y_rag.shape == (1300, out_features)
    assert jnp.allclose(y_rag, reference(x_rag), atol=1e-5, rtol=1e-5), "ragged mismatch"

    print("KERNEL_OK")
</pallas_src>

<mosaic_0001>
module attributes {stable_mosaic.version = 11 : i64} {
  func.func @_recalibrate_kernel(%arg0: memref<8x32xf32, #tpu.memory_space<vmem>>, %arg1: memref<32x128xf32, #tpu.memory_space<vmem>>, %arg2: memref<1x128xf32, #tpu.memory_space<vmem>>, %arg3: memref<8x16xf32, #tpu.memory_space<vmem>>) attributes {dimension_semantics = [], scalar_prefetch = 0 : i64, scratch_operands = 0 : i64, tpu.core_type = #tpu.core_type<tc>} {
    %c0 = arith.constant 0 : index
    %c0_0 = arith.constant 0 : index
    %0 = vector.load %arg0[%c0, %c0_0] : memref<8x32xf32, #tpu.memory_space<vmem>>, vector<8x32xf32>
    %cst = arith.constant 0.000000e+00 : f32
    %1 = vector.broadcast %cst : f32 to vector<8x32xf32>
    %2 = arith.maximumf %0, %1 : vector<8x32xf32>
    %c0_1 = arith.constant 0 : index
    %c0_2 = arith.constant 0 : index
    %3 = vector.load %arg1[%c0_1, %c0_2] : memref<32x128xf32, #tpu.memory_space<vmem>>, vector<32x128xf32>
    %cst_3 = arith.constant dense<0.000000e+00> : vector<8x128xf32>
    %4 = tpu.matmul %2, %3, %cst_3 {dimension_numbers = #tpu.dot_dimension_numbers<[1], [0], [0], [1], [0, 0, 1, 1], [], []>, precision = #tpu.contract_precision<fp32>} : vector<8x32xf32>, vector<32x128xf32>, vector<8x128xf32> -> vector<8x128xf32>
    %c0_4 = arith.constant 0 : index
    %c0_5 = arith.constant 0 : index
    %5 = vector.load %arg2[%c0_4, %c0_5] : memref<1x128xf32, #tpu.memory_space<vmem>>, vector<1x128xf32>
    %6 = vector.broadcast %5 : vector<1x128xf32> to vector<8x128xf32>
    %7 = arith.addf %4, %6 : vector<8x128xf32>
    %8 = vector.extract_strided_slice %7 {offsets = [0, 0], sizes = [8, 16], strides = [1, 1]} : vector<8x128xf32> to vector<8x16xf32>
    %c0_6 = arith.constant 0 : index
    %c0_7 = arith.constant 0 : index
    %9 = vector.load %arg3[%c0_6, %c0_7] : memref<8x16xf32, #tpu.memory_space<vmem>>, vector<8x16xf32>
    tpu.vector_store %arg3[%c0_6, %c0_7], %8 {strides = array<i32>} : memref<8x16xf32, #tpu.memory_space<vmem>>, vector<8x16xf32>,
    return
  }
}

</mosaic_0001>

<bundles_post_ra>
// kernel: tpu_custom_call.1
= control target key start
LH: loop header
LB: loop body
LE: loop exit
PB: predicated region body
PF: predicated region fallthrough
CT: control target
= control target key end

     0   :  { %8 = vsyncpa [#allocation3], 0  ;;  %s882_s0 = inlined_call_operand.hbm [shape: f32[8,32], index: 0, kind: input, shape index: {}]   ;;  %s883_s1 = inlined_call_operand.hbm [shape: f32[32,128], index: 1, kind: input, shape index: {}]   ;;  %s884_s2 = inlined_call_operand.vmem [shape: f32[1,128], index: 2, kind: input, shape index: {}]   ;;  %s885_s3 = inlined_call_operand.hbm [shape: f32[8,16], index: 3, kind: output, shape index: {}]  }
   0x1   :  { %9 = vsyncpa [#allocation6], 0 }
   0x2   :  { %10 = vsyncpa [#allocation4], 0  ;;  %s784_s12 = smov [#allocation2]   ;;  %s785_s14 = smov [#allocation5]  }
   0x3   :  { %s17_s13 = sshll.u32 %s784_s12, 4  ;;  %s26_s15 = sshll.u32 %s785_s14, 4  ;;  %s18_s13 = int_to_ptr.vmem [resolvable:$true] %s17_s13  ;;  %s812_s15 = int_to_ptr.vmem [resolvable:$true] %s26_s15 }
   0x4   :  { %s712_s18 = scalar_lea.hbm %s882_s0, 128 }
   0x5   :  { %p713_p0 = scmp.ne.s32.totalorder %s882_s0, %s712_s18  ;;  %p716_p1 = scmp.lt.u32.totalorder %s712_s18, %s882_s0 }
   0x7   :  { %p718_p2 = pnand %p716_p1, %p713_p0 }
   0x9   :  { %721 = shalt.err (!%p718_p2)
}
   0xa   :  { %s722_s23 = scalar_lea.vmem %s18_s13, 128  ;;  %p727_p4 = scmp.lt.s32.totalorder %s18_s13, %s18_s13 }
   0xb   :  { %p723_p3 = scmp.ne.s32.totalorder %s18_s13, %s722_s23  ;;  %p728_p5 = scmp.lt.s32.totalorder %s722_s23, %s722_s23 }
   0xd   :  { %p729_p6 = por %p728_p5, %p727_p4 }
   0xf   :  { %p730_p7 = pnand %p729_p6, %p723_p3 }
  0x11   :  { %733 = shalt.err (!%p730_p7)
}
  0x12   :  { %20 = dma.hbm_to_vmem [thread:$0]  %s882_s0, 128, %s18_s13, [#allocation3]  }
  0x13   :  { %s734_s28 = scalar_lea.hbm %s883_s1, 512 }
  0x14   :  { %p735_p8 = scmp.ne.s32.totalorder %s883_s1, %s734_s28  ;;  %p738_p9 = scmp.lt.u32.totalorder %s734_s28, %s883_s1 }
  0x16   :  { %p740_p10 = pnand %p738_p9, %p735_p8 }
  0x18   :  { %743 = shalt.err (!%p740_p10)
}
  0x19   :  { %s744_s6 = scalar_lea.vmem %s812_s15, 512  ;;  %p749_p12 = scmp.lt.s32.totalorder %s812_s15, %s812_s15 }
  0x1a   :  { %p745_p11 = scmp.ne.s32.totalorder %s812_s15, %s744_s6  ;;  %p750_p13 = scmp.lt.s32.totalorder %s744_s6, %s744_s6 }
  0x1c   :  { %p751_p0 = por %p750_p13, %p749_p12 }
  0x1e   :  { %p752_p1 = pnand %p751_p0, %p745_p11 }
  0x20   :  { %755 = shalt.err (!%p752_p1)
}
  0x21   :  { %s786_s0 = smov 128   ;;  %s787_s7 = smov 8  }
  0x22   :  { %32 = dma.hbm_to_vmem [thread:$0]  %s883_s1, 512, %s812_s15, [#allocation6], %s786_s0, %s786_s0, %s787_s7  }
  0x23   :  { %778 = dma.done.wait [#allocation3], 128  }
  0x24   :  { %779 = vsyncadd [#allocation3], 4294967168 }
  0x25   :  { %780 = dma.done.wait [#allocation6], 512  }
  0x26   :  { %781 = vsyncadd [#allocation6], 4294966784  ;;  %v788_v0 = vmov 0.0|0.0   ;;  %vm789_vm0 = vmmov 0   ;;  %v790_v1 = vmov 0.0   ;;  %v43_v2 = vld [vmem:[#allocation5] sm:$0xff] }
  0x27   :  { %676 = vmatprep.subr.bf16.mxu0 %v788_v0  ;;  %658 = vmatprep.subr.bf16.mxu1 %v788_v0  ;;  %v44_v3 = vld [vmem:[#allocation5 + $0x8] sm:$0xff]  ;;  %v45_v4 = vld [vmem:[#allocation5 + $0x10] sm:$0xff]  ;;  %v59_v5 = vand.u32 4294901760, %v43_v2  ;;  %v46_v7 = vld [vmem:[#allocation5 + $0x18] sm:$0xff]  ;;  %vm54_vm1 = vcmask 261120   ;;  %s791_s11 = smov [#allocation7]  }
  0x28   :  { %633 = vmatprep.mubr.msk.f32.mxu0 %vm789_vm0, %v790_v1  ;;  %600 = vmatprep.mubr.msk.f32.mxu1 %vm789_vm0, %v790_v1  ;;  %v62_v6 = vand.u32 4294901760, %v44_v3  ;;  %v65_v8 = vand.u32 4294901760, %v45_v4  ;;  %v41_v9 = vld [vmem:[#allocation2] sm:$0xff]  ;;  %v68_v10 = vand.u32 4294901760, %v46_v7  ;;  %s551_s12 = sshll.u32 %s791_s11, 4  ;;  %vm543_vm2 = vcmask 130048   ;;  %s552_s12 = int_to_ptr.vmem [resolvable:$true] %s551_s12 }
  0x29   :  { %v42_v11 = vmax.f32 %v41_v9, 0.0  ;;  %v139_v13 = vsub.f32 %v43_v2, %v59_v5  ;;  %v561_v44 = vld [vmem:[%s884_s2] ss:$0 sm:$0xff]  ;;  %s756_s13 = scalar_lea.vmem %s552_s12, 128  ;;  %p761_p3 = scmp.lt.s32.totalorder %s552_s12, %s552_s12 }
  0x2a   :  { %v659_v12 = vpack.c.bf16 %v62_v6, %v59_v5  ;;  %v146_v14 = vsub.f32 %v44_v3, %v62_v6  ;;  %v153_v15 = vsub.f32 %v45_v4, %v65_v8  ;;  %v662_v16 = vpack.c.bf16 %v68_v10, %v65_v8  ;;  %p757_p2 = scmp.ne.s32.totalorder %s552_s12, %s756_s13  ;;  %p762_p4 = scmp.lt.s32.totalorder %s756_s13, %s756_s13 }
  0x2b   :  { %v160_v17 = vsub.f32 %v46_v7, %v68_v10  ;;  %v56_v18 = vsel %vm54_vm1, %v42_v11, 0  ;;  %v140_v20 = vand.u32 4294901760, %v139_v13 }
  0x2c   :  { %678 = vmatpush3.bf16.msra.mxu0 %v659_v12  ;;  %660 = vmatpush3.bf16.msra.mxu1 %v659_v12  ;;  %v127_v19 = vand.u32 4294901760, %v56_v18  ;;  %v147_v21 = vand.u32 4294901760, %v146_v14  ;;  %v154_v22 = vand.u32 4294901760, %v153_v15  ;;  %v671_v40 = vpack.c.bf16 %v146_v14, %v139_v13  ;;  %p763_p5 = por %p762_p4, %p761_p3 }
  0x2d   :  { %679 = vmatprep.subr.bf16.mxu0 %v788_v0  ;;  %661 = vmatprep.subr.bf16.mxu1 %v788_v0  ;;  %v161_v23 = vand.u32 4294901760, %v160_v17  ;;  %v141_v25 = vsub.f32 %v139_v13, %v140_v20  ;;  %v674_v41 = vpack.c.bf16 %v160_v17, %v153_v15 }
  0x2e   :  { %v128_v24 = vsub.f32 %v56_v18, %v127_v19  ;;  %v148_v26 = vsub.f32 %v146_v14, %v147_v21  ;;  %v155_v27 = vsub.f32 %v153_v15, %v154_v22  ;;  %v683_v30 = vpack.c.bf16 %v147_v21, %v140_v20  ;;  %p764_p6 = pnand %p763_p5, %p757_p2 }
  0x2f   :  { %v162_v28 = vsub.f32 %v160_v17, %v161_v23  ;;  %v142_v31 = vand.u32 4294901760, %v141_v25  ;;  %v686_v38 = vpack.c.bf16 %v161_v23, %v154_v22 }
  0x30   :  { %681 = vmatpush3.bf16.msra.mxu0 %v662_v16  ;;  %663 = vmatpush3.bf16.msra.mxu1 %v662_v16  ;;  %v129_v29 = vand.u32 4294901760, %v128_v24  ;;  %v149_v32 = vand.u32 4294901760, %v148_v26  ;;  %v156_v35 = vand.u32 4294901760, %v155_v27 }
  0x31   :  { %682 = vmatprep.subr.bf16.mxu0 %v788_v0  ;;  %664 = vmatprep.subr.bf16.mxu1 %v788_v0  ;;  %v163_v36 = vand.u32 4294901760, %v162_v28 }
  0x32   :  { %v130_v33 = vsub.f32 %v128_v24, %v129_v29  ;;  %v665_v34 = vpack.c.bf16 %v149_v32, %v142_v31 }
  0x33   :  { %634 = vmatmul.mubr.f32.vlgmr.msra.gmra.mrb[0].mxu0 %v129_v29  ;;  %v668_v39 = vpack.c.bf16 %v163_v36, %v156_v35 }
  0x34   :  { %684 = vmatpush3.bf16.msra.mxu0 %v683_v30  ;;  %v131_v37 = vand.u32 4294901760, %v130_v33  ;;  %644 = vmatprep.mubr.msk.f32.mxu0 %vm789_vm0, %v790_v1 }
  0x35   :  { %685 = vmatprep.subr.bf16.mxu0 %v788_v0 }
  0x36   :  { %601 = vmatmul.mubr.f32.vlgmr.msra.gmra.mrb[0].mxu1 %v131_v37 }
  0x37   :  { %666 = vmatpush3.bf16.msra.mxu1 %v665_v34  ;;  %611 = vmatprep.mubr.msk.f32.mxu1 %vm789_vm0, %v790_v1 }
  0x38   :  { %667 = vmatprep.subr.bf16.mxu1 %v788_v0  ;;  %687 = vmatpush3.bf16.msra.mxu0 %v686_v38 }
  0x39   :  { %688 = vmatprep.subr.bf16.mxu0 %v788_v0 }
  0x3b   :  { %669 = vmatpush3.bf16.msra.mxu1 %v668_v39  ;;  %645 = vmatmul.mubr.f32.vlgmr.msra.gmra.mrb[0].mxu0 %v127_v19 }
  0x3c   :  { %670 = vmatprep.subr.bf16.mxu1 %v788_v0  ;;  %690 = vmatpush3.bf16.msra.mxu0 %v659_v12 }
  0x3d   :  { %691 = vmatprep.subr.bf16.mxu0 %v788_v0  ;;  %655 = vmatprep.mubr.msk.f32.mxu0 %vm789_vm0, %v790_v1 }
  0x3e   :  { %612 = vmatmul.mubr.f32.vlgmr.msra.gmra.mrb[0].mxu1 %v127_v19 }
  0x3f   :  { %672 = vmatpush3.bf16.msra.mxu1 %v671_v40  ;;  %622 = vmatprep.mubr.msk.f32.mxu1 %vm789_vm0, %v790_v1 }
  0x40   :  { %673 = vmatprep.subr.bf16.mxu1 %v788_v0  ;;  %693 = vmatpush3.bf16.msra.mxu0 %v662_v16 }
  0x43   :  { %675 = vmatpush3.bf16.msra.mxu1 %v674_v41  ;;  %656 = vmatmul.mubr.f32.vlgmr.msra.gmra.mrb[0].mxu0 %v127_v19 }
  0x46   :  { %623 = vmatmul.mubr.f32.vlgmr.msra.gmra.mrb[0].mxu1 %v128_v24 }
 0x116   :  { %v539_v42 = vpop.f32.mrb[0].mxu0 }
 0x117   :  { %v657_v43 = vpop.f32.mrb[1].mxu0 }
 0x119   :  { %v304_v45 = vpop.f32.mrb[0].mxu1 }
 0x11a   :  { %v694_v46 = vadd.f32 %v561_v44, %v304_v45  ;;  %v624_v47 = vpop.f32.mrb[1].mxu1 }
 0x11c   :  { %v695_v48 = vadd.f32 %v694_v46, %v539_v42 }
 0x11e   :  { %544 = vst.msk [vmem:[#allocation7] sm:$0xff] %vm543_vm2, %v695_v48 }
 0x11f   :  { %767 = shalt.err (!%p764_p6)
}
 0x120   :  { %s768_s2 = scalar_lea.hbm %s885_s3, 128 }
 0x121   :  { %p769_p7 = scmp.ne.s32.totalorder %s885_s3, %s768_s2  ;;  %p772_p8 = scmp.lt.u32.totalorder %s768_s2, %s885_s3 }
 0x123   :  { %p774_p9 = pnand %p772_p8, %p769_p7 }
 0x125   :  { %777 = shalt.err (!%p774_p9)
}
 0x126   :  { %554 = dma.vmem_to_hbm [thread:$0]  %s552_s12, 128, %s885_s3, [#allocation4]  }
 0x127   :  { %782 = dma.done.wait [#allocation4], 128  }
 0x128   :  { %783 = vsyncadd [#allocation4], 4294967168 }
 0x129   :  { %558 = vsyncpa [#allocation3], 1 }
 0x12a   :  { %559 = vsyncpa [#allocation6], 1 }
 0x12b   :  { %560 = vsyncpa [#allocation4], 1 }

</bundles_post_ra>
